<compile_context>
chip_gen: v7x
topology: tpu7x:2x2x1
jax: 0.10.0
libtpu: 0.0.40
codegen_flags: <defaults>
</compile_context>

<pallas_src>
import jax
import jax.numpy as jnp
from jax import lax
from jax.experimental import pallas as pl
from jax.experimental.pallas import tpu as pltpu


ALPHA = 0.05   # LeakyReLU slope

# Packed-parameter layout: one (32, _PCOLS) f32 buffer, lane-aligned regions.
#   w1 : rows 0:32, cols   0:9     conv1  (Cout=32 padded, K*Cin = 9*1)
#   w2 : rows 0:16, cols 128:352   conv2  (16, 7*32 padded)
#   w3 : rows 0:16, cols 384:496   conv3  (16 padded, 7*16)
#   w4 : rows 0:16, col  512       conv4 1x1 weight as a column (16 padded, 1)
#   b1 : rows 0:32, col  513       b2: col 514   b3: col 515   b4: row 0 col 516
_PCOLS = 640


def _net1_kernel(x_ref, w_ref, m_ref, o_ref):
    """Fused 4-layer forward pass.

    x_ref / o_ref : (1, B*L)   batch folded into the lane axis
    w_ref         : (32, 640)  packed weights + biases (layout above)
    m_ref         : (16, B*L)  precomputed 0/1 'same'-padding edge masks
                               (rows 0:9 -> K=9/pad=4 taps, rows 9:16 -> K=7/pad=3)
    """
    BL = x_ref.shape[1]

    # ---- hoisted constants: edge masks (sliced once, reused by conv2 & conv3)
    masks9 = [m_ref[k:k + 1, :] for k in range(9)]
    masks7 = [m_ref[9 + k:10 + k, :] for k in range(7)]

    # ---- packed params: static, lane-aligned slices of one VMEM buffer
    w1 = w_ref[0:32, 0:9]
    w2 = w_ref[0:16, 128:352]
    w3 = w_ref[0:16, 384:496]
    w4 = w_ref[0:16, 512:513]
    b1 = w_ref[0:32, 513:514]
    b2 = w_ref[0:16, 514:515]
    b3 = w_ref[0:16, 515:516]
    b4 = w_ref[0:1, 516:517]

    def conv_same(h, w2d, bias, masks, pad, alpha):
        """'same' 1D conv + LeakyReLU with the batch folded into lanes.

        h:    (Cin, B*L)      all batch elements side by side on the lane axis
        w2d:  (Cout, K*Cin)   row index k*Cin + c
        bias: (Cout, 1)
        One MXU push per layer. pltpu.roll (XLU) + precomputed 0/1 mask multiply
        (VPU) implement zero padding without taps crossing batch boundaries.
        """
        cols = []
        for k, mk in enumerate(masks):
            shift = (pad - k) % BL
            shifted = pltpu.roll(h, shift=shift, axis=1) if shift else h
            # k == pad is the unshifted tap: its mask is all ones, skip the mul.
            cols.append(shifted if k == pad else shifted * mk)
        # Pieces are 8-row aligned (Cin in {32, 16}) except the tiny conv1 one,
        # so this concat is a contiguous-layout no-op for the big layers.
        # (On v7x, K accumulated per-tap matmuls into the MRB would skip the
        #  concat entirely; on v5e/v6e the single im2col dot is preferable.)
        patches = cols[0] if len(cols) == 1 else jnp.concatenate(cols, axis=0)
        acc = jnp.dot(w2d, patches, preferred_element_type=jnp.float32) + bias
        return jnp.where(acc > 0, acc, alpha * acc)

    h = x_ref[...]                                   # (1,  B*L)   Cin = 1
    h = conv_same(h, w1, b1, masks9, 4, ALPHA)       # (32, B*L)   rows 25:32 == 0
    h = conv_same(h, w2, b2, masks7, 3, ALPHA)       # (16, B*L)
    h = conv_same(h, w3, b3, masks7, 3, ALPHA)       # (16, B*L)   rows 10:16 == 0
    # conv4: 1x1, 10(->16)->1 on the VPU + aligned sublane reduce; ReLU epilogue.
    y = jnp.sum(h * w4, axis=0, keepdims=True) + b4  # (1, B*L)
    o_ref[...] = jnp.maximum(y, 0.0)                 # one unmasked lane-dense store


def _pack_params(params):
    """Zero-pad channels to sublane multiples and pack everything into one
    (32, 640) f32 buffer with lane-aligned column offsets."""
    (w1, b1), (w2, b2), (w3, b3), (w4, b4) = params

    def to2d(w, cout_pad, cin_pad):
        cout, cin, k = w.shape
        wp = jnp.zeros((cout_pad, cin_pad, k), jnp.float32).at[:cout, :cin, :].set(w)
        # (Cout, Cin, K) -> (Cout, K*Cin) with row index k*Cin + c
        return jnp.transpose(wp, (0, 2, 1)).reshape(cout_pad, k * cin_pad)

    P = jnp.zeros((32, _PCOLS), jnp.float32)
    P = P.at[:32, 0:9].set(to2d(w1, 32, 1))        # (32, 9)
    P = P.at[:16, 128:352].set(to2d(w2, 16, 32))   # (16, 224)
    P = P.at[:16, 384:496].set(to2d(w3, 16, 16))   # (16, 112)
    P = P.at[:10, 512].set(w4[0, :, 0])            # conv4 weight column
    P = P.at[:25, 513].set(b1)
    P = P.at[:16, 514].set(b2)
    P = P.at[:10, 515].set(b3)
    P = P.at[0, 516].set(b4[0])
    return P


def _edge_masks(L, BL):
    """0/1 'same'-padding masks, shape (16, BL).
    Rows 0:9 -> (K=9, pad=4) taps; rows 9:16 -> (K=7, pad=3) taps.
    Row k is 1 where tap k stays inside its own batch element's [0, L) range."""
    pos = jnp.arange(BL, dtype=jnp.int32) % L
    rows = []
    for K, pad in ((9, 4), (7, 3)):
        for k in range(K):
            rows.append(((pos >= (pad - k)) & (pos < (L + pad - k)))
                        .astype(jnp.float32))
    return jnp.stack(rows, axis=0)


@jax.jit
def net1_forward(x, params):
    """x: (B, L) f32; params: list of (w (Cout,Cin,K), b (Cout,)) PyTorch layout."""
    B, L = x.shape
    BL = B * L
    xf = x.reshape(1, BL)             # batch folded into the lane axis
    P = _pack_params(params)
    M = _edge_masks(L, BL)

    vmem = pl.BlockSpec(memory_space=pltpu.MemorySpace.VMEM)
    # Gridless single invocation: the whole net (< 1 MiB live data) runs in one
    # shot with all activations resident in VMEM/vregs.  If B or L grows, add a
    # grid over B / tiled L (with halo) and mark it "parallel" so v7x's two
    # TensorCores can split the work.
    y = pl.pallas_call(
        _net1_kernel,
        out_shape=jax.ShapeDtypeStruct((1, BL), jnp.float32),
        in_specs=[vmem, vmem, vmem],
        out_specs=vmem,
    )(xf, P, M)
    return y.reshape(B, L)


def init_params(key):
    """Deterministic synthetic params in PyTorch layout: (Cout, Cin, K), (Cout,)."""
    specs = [
        (25, 1, 9),   # conv1
        (16, 25, 7),  # conv2
        (10, 16, 7),  # conv3
        (1, 10, 1),   # conv4
    ]
    params = []
    for i, (cout, cin, k) in enumerate(specs):
        kw, kb = jax.random.split(jax.random.fold_in(key, i))
        bound = 1.0 / jnp.sqrt(cin * k)     # mimic PyTorch default init scale
        w = jax.random.uniform(kw, (cout, cin, k), jnp.float32, -bound, bound)
        b = jax.random.uniform(kb, (cout,), jnp.float32, -bound, bound)
        params.append((w, b))
    return params


def net1_reference(x, params):
    """Pure-JAX reference (lax.conv) for validation."""
    h = x[:, None, :]
    cfgs = [(4, 0.05), (3, 0.05), (3, 0.05), (0, 0.0)]
    for (w, b), (pad, alpha) in zip(params, cfgs):
        h = lax.conv_general_dilated(
            h, w, window_strides=(1,), padding=[(pad, pad)],
            dimension_numbers=("NCH", "OIH", "NCH"))
        h = h + b[None, :, None]
        h = jnp.where(h > 0, h, alpha * h)
    return h[:, 0, :]


if __name__ == "__main__":
    key = jax.random.PRNGKey(0)
    B, L = 2, 128
    kx, kp = jax.random.split(key)
    x = jax.random.normal(kx, (B, L), jnp.float32)
    params = init_params(kp)

    out = jax.block_until_ready(net1_forward(x, params))
    assert out.shape == (B, L) and out.dtype == jnp.float32

    ref = jax.block_until_ready(net1_reference(x, params))
    assert jnp.allclose(out, ref, rtol=5e-3, atol=5e-3), (
        float(jnp.max(jnp.abs(out - ref))))

    print("KERNEL_OK")
</pallas_src>

<mosaic_0001>
module attributes {stable_mosaic.version = 11 : i64} {
  func.func @_net1_kernel(%arg0: memref<1x256xf32, #tpu.memory_space<vmem>>, %arg1: memref<32x640xf32, #tpu.memory_space<vmem>>, %arg2: memref<16x256xf32, #tpu.memory_space<vmem>>, %arg3: memref<1x256xf32, #tpu.memory_space<vmem>>) attributes {dimension_semantics = [], scalar_prefetch = 0 : i64, scratch_operands = 0 : i64, tpu.core_type = #tpu.core_type<tc>} {
    %c0 = arith.constant 0 : index
    %c0_0 = arith.constant 0 : index
    %0 = vector.load %arg2[%c0, %c0_0] : memref<16x256xf32, #tpu.memory_space<vmem>>, vector<1x256xf32>
    %c1 = arith.constant 1 : index
    %c0_1 = arith.constant 0 : index
    %1 = vector.load %arg2[%c1, %c0_1] : memref<16x256xf32, #tpu.memory_space<vmem>>, vector<1x256xf32>
    %c2 = arith.constant 2 : index
    %c0_2 = arith.constant 0 : index
    %2 = vector.load %arg2[%c2, %c0_2] : memref<16x256xf32, #tpu.memory_space<vmem>>, vector<1x256xf32>
    %c3 = arith.constant 3 : index
    %c0_3 = arith.constant 0 : index
    %3 = vector.load %arg2[%c3, %c0_3] : memref<16x256xf32, #tpu.memory_space<vmem>>, vector<1x256xf32>
    %c5 = arith.constant 5 : index
    %c0_4 = arith.constant 0 : index
    %4 = vector.load %arg2[%c5, %c0_4] : memref<16x256xf32, #tpu.memory_space<vmem>>, vector<1x256xf32>
    %c6 = arith.constant 6 : index
    %c0_5 = arith.constant 0 : index
    %5 = vector.load %arg2[%c6, %c0_5] : memref<16x256xf32, #tpu.memory_space<vmem>>, vector<1x256xf32>
    %c7 = arith.constant 7 : index
    %c0_6 = arith.constant 0 : index
    %6 = vector.load %arg2[%c7, %c0_6] : memref<16x256xf32, #tpu.memory_space<vmem>>, vector<1x256xf32>
    %c8 = arith.constant 8 : index
    %c0_7 = arith.constant 0 : index
    %7 = vector.load %arg2[%c8, %c0_7] : memref<16x256xf32, #tpu.memory_space<vmem>>, vector<1x256xf32>
    %c9 = arith.constant 9 : index
    %c0_8 = arith.constant 0 : index
    %8 = vector.load %arg2[%c9, %c0_8] : memref<16x256xf32, #tpu.memory_space<vmem>>, vector<1x256xf32>
    %c10 = arith.constant 10 : index
    %c0_9 = arith.constant 0 : index
    %9 = vector.load %arg2[%c10, %c0_9] : memref<16x256xf32, #tpu.memory_space<vmem>>, vector<1x256xf32>
    %c11 = arith.constant 11 : index
    %c0_10 = arith.constant 0 : index
    %10 = vector.load %arg2[%c11, %c0_10] : memref<16x256xf32, #tpu.memory_space<vmem>>, vector<1x256xf32>
    %c13 = arith.constant 13 : index
    %c0_11 = arith.constant 0 : index
    %11 = vector.load %arg2[%c13, %c0_11] : memref<16x256xf32, #tpu.memory_space<vmem>>, vector<1x256xf32>
    %c14 = arith.constant 14 : index
    %c0_12 = arith.constant 0 : index
    %12 = vector.load %arg2[%c14, %c0_12] : memref<16x256xf32, #tpu.memory_space<vmem>>, vector<1x256xf32>
    %c15 = arith.constant 15 : index
    %c0_13 = arith.constant 0 : index
    %13 = vector.load %arg2[%c15, %c0_13] : memref<16x256xf32, #tpu.memory_space<vmem>>, vector<1x256xf32>
    %c0_14 = arith.constant 0 : index
    %c0_15 = arith.constant 0 : index
    %14 = vector.load %arg1[%c0_14, %c0_15] : memref<32x640xf32, #tpu.memory_space<vmem>>, vector<32x9xf32>
    %c0_16 = arith.constant 0 : index
    %c128 = arith.constant 128 : index
    %15 = vector.load %arg1[%c0_16, %c128] : memref<32x640xf32, #tpu.memory_space<vmem>>, vector<16x224xf32>
    %c0_17 = arith.constant 0 : index
    %c384 = arith.constant 384 : index
    %16 = vector.load %arg1[%c0_17, %c384] : memref<32x640xf32, #tpu.memory_space<vmem>>, vector<16x112xf32>
    %c0_18 = arith.constant 0 : index
    %c512 = arith.constant 512 : index
    %17 = vector.load %arg1[%c0_18, %c512] : memref<32x640xf32, #tpu.memory_space<vmem>>, vector<16x1xf32>
    %c0_19 = arith.constant 0 : index
    %c513 = arith.constant 513 : index
    %18 = vector.load %arg1[%c0_19, %c513] : memref<32x640xf32, #tpu.memory_space<vmem>>, vector<32x1xf32>
    %c0_20 = arith.constant 0 : index
    %c514 = arith.constant 514 : index
    %19 = vector.load %arg1[%c0_20, %c514] : memref<32x640xf32, #tpu.memory_space<vmem>>, vector<16x1xf32>
    %c0_21 = arith.constant 0 : index
    %c515 = arith.constant 515 : index
    %20 = vector.load %arg1[%c0_21, %c515] : memref<32x640xf32, #tpu.memory_space<vmem>>, vector<16x1xf32>
    %c0_22 = arith.constant 0 : index
    %c516 = arith.constant 516 : index
    %21 = vector.load %arg1[%c0_22, %c516] : memref<32x640xf32, #tpu.memory_space<vmem>>, vector<1x1xf32>
    %c0_23 = arith.constant 0 : index
    %c0_24 = arith.constant 0 : index
    %22 = vector.load %arg0[%c0_23, %c0_24] : memref<1x256xf32, #tpu.memory_space<vmem>>, vector<1x256xf32>
    %c4_i32 = arith.constant 4 : i32
    %23 = tpu.dynamic_rotate %22 by %c4_i32 dim 1 : vector<1x256xf32>, i32 -> vector<1x256xf32>
    %24 = arith.mulf %23, %0 : vector<1x256xf32>
    %c3_i32 = arith.constant 3 : i32
    %25 = tpu.dynamic_rotate %22 by %c3_i32 dim 1 : vector<1x256xf32>, i32 -> vector<1x256xf32>
    %26 = arith.mulf %25, %1 : vector<1x256xf32>
    %c2_i32 = arith.constant 2 : i32
    %27 = tpu.dynamic_rotate %22 by %c2_i32 dim 1 : vector<1x256xf32>, i32 -> vector<1x256xf32>
    %28 = arith.mulf %27, %2 : vector<1x256xf32>
    %c1_i32 = arith.constant 1 : i32
    %29 = tpu.dynamic_rotate %22 by %c1_i32 dim 1 : vector<1x256xf32>, i32 -> vector<1x256xf32>
    %30 = arith.mulf %29, %3 : vector<1x256xf32>
    %c255_i32 = arith.constant 255 : i32
    %31 = tpu.dynamic_rotate %22 by %c255_i32 dim 1 : vector<1x256xf32>, i32 -> vector<1x256xf32>
    %32 = arith.mulf %31, %4 : vector<1x256xf32>
    %c254_i32 = arith.constant 254 : i32
    %33 = tpu.dynamic_rotate %22 by %c254_i32 dim 1 : vector<1x256xf32>, i32 -> vector<1x256xf32>
    %34 = arith.mulf %33, %5 : vector<1x256xf32>
    %c253_i32 = arith.constant 253 : i32
    %35 = tpu.dynamic_rotate %22 by %c253_i32 dim 1 : vector<1x256xf32>, i32 -> vector<1x256xf32>
    %36 = arith.mulf %35, %6 : vector<1x256xf32>
    %c252_i32 = arith.constant 252 : i32
    %37 = tpu.dynamic_rotate %22 by %c252_i32 dim 1 : vector<1x256xf32>, i32 -> vector<1x256xf32>
    %38 = arith.mulf %37, %7 : vector<1x256xf32>
    %39 = tpu.concatenate %24, %26, %28, %30, %22, %32, %34, %36, %38 in 0 : vector<1x256xf32>, vector<1x256xf32>, vector<1x256xf32>, vector<1x256xf32>, vector<1x256xf32>, vector<1x256xf32>, vector<1x256xf32>, vector<1x256xf32>, vector<1x256xf32> -> vector<9x256xf32>
    %cst = arith.constant dense<0.000000e+00> : vector<32x256xf32>
    %40 = tpu.matmul %14, %39, %cst {dimension_numbers = #tpu.dot_dimension_numbers<[1], [0], [0], [1], [0, 0, 1, 1], [], []>} : vector<32x9xf32>, vector<9x256xf32>, vector<32x256xf32> -> vector<32x256xf32>
    %41 = vector.broadcast %18 : vector<32x1xf32> to vector<32x256xf32>
    %42 = arith.addf %40, %41 : vector<32x256xf32>
    %cst_25 = arith.constant 0.000000e+00 : f32
    %43 = vector.broadcast %cst_25 : f32 to vector<32x256xf32>
    %44 = arith.cmpf ogt, %42, %43 : vector<32x256xf32>
    %cst_26 = arith.constant 5.000000e-02 : f32
    %45 = vector.broadcast %cst_26 : f32 to vector<32x256xf32>
    %46 = arith.mulf %45, %42 : vector<32x256xf32>
    %47 = arith.select %44, %42, %46 : vector<32x256xi1>, vector<32x256xf32>
    %c3_i32_27 = arith.constant 3 : i32
    %48 = tpu.dynamic_rotate %47 by %c3_i32_27 dim 1 : vector<32x256xf32>, i32 -> vector<32x256xf32>
    %49 = vector.broadcast %8 : vector<1x256xf32> to vector<32x256xf32>
    %50 = arith.mulf %48, %49 : vector<32x256xf32>
    %c2_i32_28 = arith.constant 2 : i32
    %51 = tpu.dynamic_rotate %47 by %c2_i32_28 dim 1 : vector<32x256xf32>, i32 -> vector<32x256xf32>
    %52 = vector.broadcast %9 : vector<1x256xf32> to vector<32x256xf32>
    %53 = arith.mulf %51, %52 : vector<32x256xf32>
    %c1_i32_29 = arith.constant 1 : i32
    %54 = tpu.dynamic_rotate %47 by %c1_i32_29 dim 1 : vector<32x256xf32>, i32 -> vector<32x256xf32>
    %55 = vector.broadcast %10 : vector<1x256xf32> to vector<32x256xf32>
    %56 = arith.mulf %54, %55 : vector<32x256xf32>
    %c255_i32_30 = arith.constant 255 : i32
    %57 = tpu.dynamic_rotate %47 by %c255_i32_30 dim 1 : vector<32x256xf32>, i32 -> vector<32x256xf32>
    %58 = vector.broadcast %11 : vector<1x256xf32> to vector<32x256xf32>
    %59 = arith.mulf %57, %58 : vector<32x256xf32>
    %c254_i32_31 = arith.constant 254 : i32
    %60 = tpu.dynamic_rotate %47 by %c254_i32_31 dim 1 : vector<32x256xf32>, i32 -> vector<32x256xf32>
    %61 = vector.broadcast %12 : vector<1x256xf32> to vector<32x256xf32>
    %62 = arith.mulf %60, %61 : vector<32x256xf32>
    %c253_i32_32 = arith.constant 253 : i32
    %63 = tpu.dynamic_rotate %47 by %c253_i32_32 dim 1 : vector<32x256xf32>, i32 -> vector<32x256xf32>
    %64 = vector.broadcast %13 : vector<1x256xf32> to vector<32x256xf32>
    %65 = arith.mulf %63, %64 : vector<32x256xf32>
    %66 = tpu.concatenate %50, %53, %56, %47, %59, %62, %65 in 0 : vector<32x256xf32>, vector<32x256xf32>, vector<32x256xf32>, vector<32x256xf32>, vector<32x256xf32>, vector<32x256xf32>, vector<32x256xf32> -> vector<224x256xf32>
    %cst_33 = arith.constant dense<0.000000e+00> : vector<16x256xf32>
    %67 = tpu.matmul %15, %66, %cst_33 {dimension_numbers = #tpu.dot_dimension_numbers<[1], [0], [0], [1], [0, 0, 1, 1], [], []>} : vector<16x224xf32>, vector<224x256xf32>, vector<16x256xf32> -> vector<16x256xf32>
    %68 = vector.broadcast %19 : vector<16x1xf32> to vector<16x256xf32>
    %69 = arith.addf %67, %68 : vector<16x256xf32>
    %cst_34 = arith.constant 0.000000e+00 : f32
    %70 = vector.broadcast %cst_34 : f32 to vector<16x256xf32>
    %71 = arith.cmpf ogt, %69, %70 : vector<16x256xf32>
    %cst_35 = arith.constant 5.000000e-02 : f32
    %72 = vector.broadcast %cst_35 : f32 to vector<16x256xf32>
    %73 = arith.mulf %72, %69 : vector<16x256xf32>
    %74 = arith.select %71, %69, %73 : vector<16x256xi1>, vector<16x256xf32>
    %c3_i32_36 = arith.constant 3 : i32
    %75 = tpu.dynamic_rotate %74 by %c3_i32_36 dim 1 : vector<16x256xf32>, i32 -> vector<16x256xf32>
    %76 = vector.broadcast %8 : vector<1x256xf32> to vector<16x256xf32>
    %77 = arith.mulf %75, %76 : vector<16x256xf32>
    %c2_i32_37 = arith.constant 2 : i32
    %78 = tpu.dynamic_rotate %74 by %c2_i32_37 dim 1 : vector<16x256xf32>, i32 -> vector<16x256xf32>
    %79 = vector.broadcast %9 : vector<1x256xf32> to vector<16x256xf32>
    %80 = arith.mulf %78, %79 : vector<16x256xf32>
    %c1_i32_38 = arith.constant 1 : i32
    %81 = tpu.dynamic_rotate %74 by %c1_i32_38 dim 1 : vector<16x256xf32>, i32 -> vector<16x256xf32>
    %82 = vector.broadcast %10 : vector<1x256xf32> to vector<16x256xf32>
    %83 = arith.mulf %81, %82 : vector<16x256xf32>
    %c255_i32_39 = arith.constant 255 : i32
    %84 = tpu.dynamic_rotate %74 by %c255_i32_39 dim 1 : vector<16x256xf32>, i32 -> vector<16x256xf32>
    %85 = vector.broadcast %11 : vector<1x256xf32> to vector<16x256xf32>
    %86 = arith.mulf %84, %85 : vector<16x256xf32>
    %c254_i32_40 = arith.constant 254 : i32
    %87 = tpu.dynamic_rotate %74 by %c254_i32_40 dim 1 : vector<16x256xf32>, i32 -> vector<16x256xf32>
    %88 = vector.broadcast %12 : vector<1x256xf32> to vector<16x256xf32>
    %89 = arith.mulf %87, %88 : vector<16x256xf32>
    %c253_i32_41 = arith.constant 253 : i32
    %90 = tpu.dynamic_rotate %74 by %c253_i32_41 dim 1 : vector<16x256xf32>, i32 -> vector<16x256xf32>
    %91 = vector.broadcast %13 : vector<1x256xf32> to vector<16x256xf32>
    %92 = arith.mulf %90, %91 : vector<16x256xf32>
    %93 = tpu.concatenate %77, %80, %83, %74, %86, %89, %92 in 0 : vector<16x256xf32>, vector<16x256xf32>, vector<16x256xf32>, vector<16x256xf32>, vector<16x256xf32>, vector<16x256xf32>, vector<16x256xf32> -> vector<112x256xf32>
    %cst_42 = arith.constant dense<0.000000e+00> : vector<16x256xf32>
    %94 = tpu.matmul %16, %93, %cst_42 {dimension_numbers = #tpu.dot_dimension_numbers<[1], [0], [0], [1], [0, 0, 1, 1], [], []>} : vector<16x112xf32>, vector<112x256xf32>, vector<16x256xf32> -> vector<16x256xf32>
    %95 = vector.broadcast %20 : vector<16x1xf32> to vector<16x256xf32>
    %96 = arith.addf %94, %95 : vector<16x256xf32>
    %cst_43 = arith.constant 0.000000e+00 : f32
    %97 = vector.broadcast %cst_43 : f32 to vector<16x256xf32>
    %98 = arith.cmpf ogt, %96, %97 : vector<16x256xf32>
    %cst_44 = arith.constant 5.000000e-02 : f32
    %99 = vector.broadcast %cst_44 : f32 to vector<16x256xf32>
    %100 = arith.mulf %99, %96 : vector<16x256xf32>
    %101 = arith.select %98, %96, %100 : vector<16x256xi1>, vector<16x256xf32>
    %102 = vector.broadcast %17 : vector<16x1xf32> to vector<16x256xf32>
    %103 = arith.mulf %101, %102 : vector<16x256xf32>
    %cst_45 = arith.constant dense<0.000000e+00> : vector<256xf32>
    %104 = vector.multi_reduction <add>, %103, %cst_45 [0] : vector<16x256xf32> to vector<256xf32>
    %105 = vector.shape_cast %104 : vector<256xf32> to vector<1x256xf32>
    %106 = vector.broadcast %21 : vector<1x1xf32> to vector<1x256xf32>
    %107 = arith.addf %105, %106 : vector<1x256xf32>
    %cst_46 = arith.constant 0.000000e+00 : f32
    %108 = vector.broadcast %cst_46 : f32 to vector<1x256xf32>
    %109 = arith.maximumf %107, %108 : vector<1x256xf32>
    %c0_47 = arith.constant 0 : index
    %c0_48 = arith.constant 0 : index
    %110 = vector.load %arg3[%c0_47, %c0_48] : memref<1x256xf32, #tpu.memory_space<vmem>>, vector<1x256xf32>
    tpu.vector_store %arg3[%c0_47, %c0_48], %109 {strides = array<i32>} : memref<1x256xf32, #tpu.memory_space<vmem>>, vector<1x256xf32>,
    return
  }
}

</mosaic_0001>

<bundles_post_ra>
// kernel: net1_forward.1
= control target key start
LH: loop header
LB: loop body
LE: loop exit
PB: predicated region body
PF: predicated region fallthrough
CT: control target
= control target key end

     0   :  { %v61_v0 = vlaneseq  ;;  %s2014_s0 = inlined_call_operand.vmem [shape: f32[1,256], index: 0, kind: input, shape index: {}]   ;;  %s2015_s1 = inlined_call_operand.vmem [shape: f32[32,640], index: 1, kind: input, shape index: {}]   ;;  %s2016_s2 = inlined_call_operand.vmem [shape: f32[16,256], index: 2, kind: input, shape index: {}]   ;;  %s2017_s3 = inlined_call_operand.hbm [shape: f32[1,256], index: 3, kind: output, shape index: {}]  }
   0x1   :  { %8 = vsyncpa [#allocation3], 0  ;;  %v59_v2 = vld [vmem:[%s2014_s0] sm:$0x3]  ;;  %s1244_s14 = smov 2   ;;  %s1245_s15 = smov 3  }
   0x2   :  { %v1282_v1 = vshrl.u32 %v61_v0, 7  ;;  %s1246_s0 = smov 4   ;;  %s1247_s16 = smov 1   ;;  %v1250_v7 = vmov 0.0   ;;  %v1331_v8 = vld [vmem:[%s2015_s1 + $0x48] sm:$0xff]  ;;  %v1336_v9 = vld [vmem:[%s2015_s1 + $0x20] sm:$0xff] }
   0x3   :  { %s1248_s17 = smov 127   ;;  %s1249_s18 = smov 126   ;;  %393 = vmatprep.mubr.f32.mxu0 %v1250_v7  ;;  %v1253_v10 = vmov 1   ;;  %v56_v11 = vld [vmem:[%s2015_s1 + $0x70] sm:$0xff]  ;;  %v57_v12 = vld [vmem:[%s2015_s1 + $0x98] sm:$0xff]  ;;  %v1347_v15 = vand.u32 127, %v61_v0 }
   0x4   :  { %v1288_v3 = vsub.s32 0, %v1282_v1  ;;  %v1291_v4 = vsub.s32 1, %v1282_v1  ;;  %s1251_s19 = smov 125   ;;  %s1252_s20 = smov 124   ;;  %1209 = vset.pattern.permute.xlu1 %v1253_v10  ;;  %1208 = vset.pattern.permute.xlu0 %v1253_v10  ;;  %vm269_vm5 = vcmask 1040384   ;;  %vm272_vm6 = vcmask 1041408  }
   0x5   :  { %v1079_v18 = vld [vmem:[%s2016_s2 + $0x2] ss:$8 sm:$0x3]  ;;  %v1078_v19 = vld [vmem:[%s2016_s2 + $0x1] ss:$8 sm:$0x3] }
   0x6   :  { %v1294_v5 = vrot.slane %v59_v2, %v1288_v3  ;;  %v1301_v6 = vrot.slane %v59_v2, %v1291_v4  ;;  %vm117_vm0 = vcmp.lt.s32.totalorder %v1347_v15, 2  ;;  %vm97_vm1 = vcmp.lt.s32.totalorder %v1347_v15, 3  ;;  %v15_v22 = vld [vmem:[%s2016_s2] ss:$8 sm:$0x3] }
   0x7   :  { %v1080_v23 = vld [vmem:[%s2016_s2 + $0x3] ss:$8 sm:$0x3]  ;;  %v124_v24 = vrot.slane %v1079_v18, %v1288_v3  ;;  %v104_v25 = vrot.slane %v1078_v19, %v1288_v3  ;;  %v108_v26 = vrot.slane %v1078_v19, %v1291_v4  ;;  %vm77_vm2 = vcmp.lt.s32.totalorder %v1347_v15, 4 }
   0x8   :  { %113 = vrot.lane.b32.xlu1 %v1294_v5, %s1244_s14  ;;  %93 = vrot.lane.b32.xlu0 %v1294_v5, %s1245_s15  ;;  %v128_v27 = vrot.slane %v1079_v18, %v1291_v4  ;;  %vm137_vm3 = vcmp.lt.s32.totalorder %v1347_v15, 1  ;;  %v84_v30 = vrot.slane %v15_v22, %v1288_v3  ;;  %v88_v31 = vrot.slane %v15_v22, %v1291_v4  ;;  %v1081_v34 = vld [vmem:[%s2016_s2 + $0x5] ss:$8 sm:$0x3] }
   0x9   :  { %v144_v32 = vrot.slane %v1080_v23, %v1288_v3  ;;  %v148_v33 = vrot.slane %v1080_v23, %v1291_v4  ;;  %vm157_vm4 = vcmp.lt.s32.totalorder %v1347_v15, 127  ;;  %v164_v45 = vrot.slane %v1081_v34, %v1288_v3  ;;  %v1082_v49 = vld [vmem:[%s2016_s2 + $0x6] ss:$8 sm:$0x3] }
   0xa   :  { %v168_v48 = vrot.slane %v1081_v34, %v1291_v4  ;;  %vm275_vm7 = vcmask 1042432   ;;  %vm177_vm8 = vcmp.lt.s32.totalorder %v1347_v15, 126  ;;  %v184_v60 = vrot.slane %v1082_v49, %v1288_v3  ;;  %v1083_v62 = vld [vmem:[%s2016_s2 + $0x7] ss:$8 sm:$0x3] }
   0xb   :  { %v188_v61 = vrot.slane %v1082_v49, %v1291_v4  ;;  %vm278_vm9 = vcmask 1043456   ;;  %vm197_vm10 = vcmp.lt.s32.totalorder %v1347_v15, 125  ;;  %vm281_vm11 = vcmask 1044480  }
   0xc   :  { %115 = vrot.lane.b32.xlu1 %v1301_v6, %s1244_s14  ;;  %95 = vrot.lane.b32.xlu0 %v1301_v6, %s1245_s15  ;;  %v204_v23 = vrot.slane %v1083_v62, %v1288_v3  ;;  %vm217_vm12 = vcmp.lt.s32.totalorder %v1347_v15, 124  ;;  %vm284_vm13 = vcmask 1045504   ;;  %vm287_vm14 = vcmask 1046528   ;;  %v51_v15 = vld [vmem:[%s2015_s1 + $0x40] sm:$0xff] }
   0xd   :  { %vm1254_vm15 = vmmov 1  }
  0x10   :  { %73 = vrot.lane.b32.xlu1 %v1301_v6, %s1246_s0  ;;  %71 = vrot.lane.b32.xlu0 %v1294_v5, %s1246_s0 }
  0x14   :  { %135 = vrot.lane.b32.xlu1 %v1301_v6, %s1247_s16  ;;  %133 = vrot.lane.b32.xlu0 %v1294_v5, %s1247_s16 }
  0x18   :  { %155 = vrot.lane.b32.xlu1 %v1301_v6, %s1248_s17  ;;  %153 = vrot.lane.b32.xlu0 %v1294_v5, %s1248_s17 }
  0x1c   :  { %175 = vrot.lane.b32.xlu1 %v1301_v6, %s1249_s18  ;;  %173 = vrot.lane.b32.xlu0 %v1294_v5, %s1249_s18 }
  0x20   :  { %195 = vrot.lane.b32.xlu1 %v1301_v6, %s1251_s19  ;;  %193 = vrot.lane.b32.xlu0 %v1294_v5, %s1251_s19 }
  0x24   :  { %215 = vrot.lane.b32.xlu1 %v1301_v6, %s1252_s20  ;;  %213 = vrot.lane.b32.xlu0 %v1294_v5, %s1252_s20 }
  0x28   :  { %297 = vperm.xlu1 %1209, %v1331_v8   ;;  %292 = vperm.xlu0 %1208, %v1336_v9  }
  0x2c   :  { %302 = vperm.xlu1 %1209, %v56_v11   ;;  %307 = vperm.xlu0 %1208, %v57_v12  }
  0x7a   :  { %v114_v13 = vpop.permute.xlu1 %113  ;;  %v94_v14 = vpop.permute.xlu0 %93 }
  0x7e   :  { %v116_v16 = vpop.permute.xlu1 %115  ;;  %v96_v17 = vpop.permute.xlu0 %95 }
  0x7f   :  { %v98_v28 = vsel %vm97_vm1, %v94_v14, %v96_v17  ;;  %v99_v29 = vsel %vm97_vm1, %v96_v17, %v94_v14  ;;  %v118_v35 = vsel %vm117_vm0, %v114_v13, %v116_v16  ;;  %v119_v36 = vsel %vm117_vm0, %v116_v16, %v114_v13 }
  0x80   :  { %v111_v41 = vmul.f32 %v104_v25, %v99_v29  ;;  %v112_v42 = vmul.f32 %v108_v26, %v98_v28  ;;  %v131_v50 = vmul.f32 %v124_v24, %v119_v36  ;;  %v132_v51 = vmul.f32 %v128_v27, %v118_v35  ;;  %v1084_v25 = vld [vmem:[%s2016_s2 + $0x10] ss:$8 sm:$0x3] }
  0x81   :  { %v208_v24 = vrot.slane %v1083_v62, %v1291_v4 }
  0x82   :  { %v74_v20 = vpop.permute.xlu1 %73  ;;  %v72_v21 = vpop.permute.xlu0 %71  ;;  %v235_v56 = vrot.slane %v111_v41, 7  ;;  %v236_v57 = vrot.slane %v112_v42, 7  ;;  %v241_v17 = vrot.slane %v131_v50, 6  ;;  %v242_v18 = vrot.slane %v132_v51, 6 }
  0x83   :  { %v78_v37 = vsel %vm77_vm2, %v72_v21, %v74_v20  ;;  %v79_v38 = vsel %vm77_vm2, %v74_v20, %v72_v21  ;;  %v228_v41 = vrot.slane %v1084_v25, %v1291_v4  ;;  %vm1102_vm2 = vmpackc.low %vm269_vm5, %vm1254_vm15 }
  0x84   :  { %v91_v46 = vmul.f32 %v84_v30, %v79_v38  ;;  %v92_v47 = vmul.f32 %v88_v31, %v78_v37 }
  0x86   :  { %v136_v39 = vpop.permute.xlu1 %135  ;;  %v134_v40 = vpop.permute.xlu0 %133  ;;  %v270_v63 = vsel %vm269_vm5, %v91_v46, %v235_v56  ;;  %v271_v2 = vsel %vm269_vm5, %v92_v47, %v236_v57 }
  0x87   :  { %v138_v43 = vsel %vm137_vm3, %v134_v40, %v136_v39  ;;  %v139_v44 = vsel %vm137_vm3, %v136_v39, %v134_v40  ;;  %v273_v26 = vsel %vm272_vm6, %v270_v63, %v241_v17  ;;  %v274_v27 = vsel %vm272_vm6, %v271_v2, %v242_v18 }
  0x88   :  { %v151_v52 = vmul.f32 %v144_v32, %v139_v44  ;;  %v152_v53 = vmul.f32 %v148_v33, %v138_v43  ;;  %v224_v40 = vrot.slane %v1084_v25, %v1288_v3  ;;  %vm310_vm6 = vcmask 72704  }
  0x8a   :  { %v156_v54 = vpop.permute.xlu1 %155  ;;  %v154_v55 = vpop.permute.xlu0 %153  ;;  %v247_v10 = vrot.slane %v151_v52, 5  ;;  %v248_v11 = vrot.slane %v152_v53, 5 }
  0x8b   :  { %v158_v58 = vsel %vm157_vm4, %v154_v55, %v156_v54  ;;  %v159_v59 = vsel %vm157_vm4, %v156_v54, %v154_v55 }
  0x8c   :  { %v171_v12 = vmul.f32 %v164_v45, %v158_v58  ;;  %v172_v13 = vmul.f32 %v168_v48, %v159_v59  ;;  %v276_v32 = vsel %vm275_vm7, %v273_v26, %v247_v10  ;;  %v277_v33 = vsel %vm275_vm7, %v274_v27, %v248_v11  ;;  %v42_v58 = vld [vmem:[%s2015_s1] sm:$0xff]  ;;  %v43_v59 = vld [vmem:[%s2015_s1 + $0x28] sm:$0xff] }
  0x8d   :  { %v280_v42 = vsel %vm278_vm9, %v277_v33, %v1301_v6  ;;  %v279_v43 = vsel %vm278_vm9, %v276_v32, %v1294_v5 }
  0x8e   :  { %v176_v14 = vpop.permute.xlu1 %175  ;;  %v174_v16 = vpop.permute.xlu0 %173  ;;  %v253_v28 = vrot.slane %v171_v12, 3  ;;  %v254_v29 = vrot.slane %v172_v13, 3 }
  0x8f   :  { %v178_v19 = vsel %vm177_vm8, %v174_v16, %v176_v14  ;;  %v179_v20 = vsel %vm177_vm8, %v176_v14, %v174_v16 }
  0x90   :  { %v191_v21 = vmul.f32 %v184_v60, %v178_v19  ;;  %v192_v22 = vmul.f32 %v188_v61, %v179_v20  ;;  %v283_v48 = vsel %vm281_vm11, %v280_v42, %v254_v29  ;;  %v282_v49 = vsel %vm281_vm11, %v279_v43, %v253_v28  ;;  %v44_v60 = vld [vmem:[%s2015_s1 + $0x50] sm:$0xff]  ;;  %v45_v61 = vld [vmem:[%s2015_s1 + $0x78] sm:$0xff] }
  0x92   :  { %v196_v30 = vpop.permute.xlu1 %195  ;;  %v194_v31 = vpop.permute.xlu0 %193  ;;  %v259_v34 = vrot.slane %v191_v21, 2  ;;  %v260_v35 = vrot.slane %v192_v22, 2 }
  0x93   :  { %v198_v36 = vsel %vm197_vm10, %v194_v31, %v196_v30  ;;  %v199_v37 = vsel %vm197_vm10, %v196_v30, %v194_v31 }
  0x94   :  { %v211_v38 = vmul.f32 %v204_v23, %v198_v36  ;;  %v212_v39 = vmul.f32 %v208_v24, %v199_v37  ;;  %v286_v6 = vsel %vm284_vm13, %v283_v48, %v260_v35  ;;  %v285_v52 = vsel %vm284_vm13, %v282_v49, %v259_v34 }
  0x96   :  { %v265_v44 = vrot.slane %v211_v38, 1  ;;  %v266_v45 = vrot.slane %v212_v39, 1  ;;  %v216_v46 = vpop.permute.xlu1 %215  ;;  %v214_v47 = vpop.permute.xlu0 %213 }
  0x97   :  { %v218_v50 = vsel %vm217_vm12, %v214_v47, %v216_v46  ;;  %v219_v51 = vsel %vm217_vm12, %v216_v46, %v214_v47 }
  0x98   :  { %v231_v53 = vmul.f32 %v224_v40, %v218_v50  ;;  %v232_v5 = vmul.f32 %v228_v41, %v219_v51  ;;  %v289_v54 = vsel %vm287_vm14, %v286_v6, %v266_v45  ;;  %v288_v55 = vsel %vm287_vm14, %v285_v52, %v265_v44  ;;  %v47_v44 = vld [vmem:[%s2015_s1 + $0x10] sm:$0xff] }
  0x99   :  { %v1255_v45 = vmov 2   ;;  %v1085_v52 = vld [vmem:[%s2016_s2 + $0x11] ss:$8 sm:$0x3] }
  0x9a   :  { %v1101_v56 = vpack.c.bf16 %v232_v5, %v289_v54  ;;  %v1104_v57 = vpack.c.bf16 %v231_v53, %v288_v55  ;;  %1210 = vset.pattern.permute.xlu1 %v1255_v45  ;;  %1211 = vset.pattern.permute.xlu0 %v1255_v45 }
  0x9c   :  { %1103 = vmatprep.subr.msk.bf16.mxu0 %vm1102_vm2, %v1101_v56 }
  0x9d   :  { %1106 = vmatpush1.bf16.msk.msra.mxu0 %vm1102_vm2, %v1104_v57  ;;  %vm710_vm2 = vcmask 785408  }
  0x9e   :  { %1097 = vmatprep.mubr.msk.f32.mxu1 %vm710_vm2, %v47_v44 }
  0xa0   :  { %1093 = vmatmul.mubr.msk.f32.vlgmr.msra.gmra.mrb[0].mxu0 %vm310_vm6, %v42_v58 }
  0xa1   :  { %399 = vmatprep.mubr.f32.mxu0 %v1250_v7 }
  0xa4   :  { %1094 = vmatmul.mubr.msk.f32.gmra.mrb[2].mxu0 %vm310_vm6, %v43_v59 }
  0xa5   :  { %405 = vmatprep.mubr.f32.mxu0 %v1250_v7 }
  0xa7   :  { %v293_v62 = vpop.permute.xlu0 %292  ;;  %v298_v12 = vpop.permute.xlu1 %297 }
  0xa8   :  { %1095 = vmatmul.mubr.msk.f32.gmra.mrb[4].mxu0 %vm310_vm6, %v44_v60 }
  0xa9   :  { %411 = vmatprep.mubr.f32.mxu0 %v1250_v7 }
  0xab   :  { %v303_v30 = vpop.permute.xlu1 %302  ;;  %v308_v32 = vpop.permute.xlu0 %307 }
  0xac   :  { %1096 = vmatmul.mubr.msk.f32.gmra.mrb[6].mxu0 %vm310_vm6, %v45_v61 }
  0xad   :  { %981 = vmatprep.mubr.f32.mxu0 %v1250_v7 }
 0x173   :  { %v395_v63 = vpop.f32.mrb[0].mxu0 }
 0x174   :  { %v396_v2 = vadd.f32 %v395_v63, %v293_v62  ;;  %v397_v10 = vpop.f32.mrb[1].mxu0 }
 0x175   :  { %v398_v23 = vadd.f32 %v397_v10, %v293_v62 }
 0x176   :  { %vm418_vm5 = vcmp.gt.f32.partialorder %v396_v2, 0.0  ;;  %v426_v11 = vmul.f32 0.05, %v396_v2 }
 0x177   :  { %v401_v13 = vpop.f32.mrb[2].mxu0  ;;  %v427_v25 = vmul.f32 0.05, %v398_v23  ;;  %vm419_vm9 = vcmp.gt.f32.partialorder %v398_v23, 0.0 }
 0x178   :  { %v1456_v14 = vsel %vm418_vm5, %v396_v2, %v426_v11  ;;  %v402_v16 = vadd.f32 %v401_v13, %v298_v12  ;;  %v403_v17 = vpop.f32.mrb[3].mxu0 }
 0x179   :  { %442 = vrot.lane.b32.xlu1 %v1456_v14, %s1245_s15  ;;  %v404_v26 = vadd.f32 %v403_v17, %v298_v12  ;;  %v1474_v27 = vsel %vm419_vm9, %v398_v23, %v427_v25 }
 0x17a   :  { %vm420_vm7 = vcmp.gt.f32.partialorder %v402_v16, 0.0  ;;  %v428_v18 = vmul.f32 0.05, %v402_v16 }
 0x17b   :  { %v407_v19 = vpop.f32.mrb[4].mxu0  ;;  %v429_v28 = vmul.f32 0.05, %v404_v26  ;;  %vm421_vm11 = vcmp.gt.f32.partialorder %v404_v26, 0.0 }
 0x17c   :  { %v1460_v20 = vsel %vm420_vm7, %v402_v16, %v428_v18  ;;  %v409_v21 = vpop.f32.mrb[5].mxu0  ;;  %v408_v31 = vadd.f32 %v407_v19, %v303_v30 }
 0x17d   :  { %444 = vrot.lane.b32.xlu0 %v1460_v20, %s1245_s15  ;;  %485 = vrot.lane.b32.xlu1 %v1456_v14, %s1244_s14  ;;  %v1480_v29 = vsel %vm421_vm11, %v404_v26, %v429_v28  ;;  %v410_v37 = vadd.f32 %v409_v21, %v303_v30 }
 0x17e   :  { %v430_v33 = vmul.f32 0.05, %v408_v31  ;;  %vm422_vm12 = vcmp.gt.f32.partialorder %v408_v31, 0.0 }
 0x17f   :  { %v413_v22 = vpop.f32.mrb[6].mxu0  ;;  %v431_v39 = vmul.f32 0.05, %v410_v37  ;;  %vm423_vm14 = vcmp.gt.f32.partialorder %v410_v37, 0.0 }
 0x180   :  { %v415_v24 = vpop.f32.mrb[7].mxu0  ;;  %v414_v34 = vadd.f32 %v413_v22, %v308_v32  ;;  %v1494_v35 = vsel %vm422_vm12, %v408_v31, %v430_v33 }
 0x181   :  { %487 = vrot.lane.b32.xlu0 %v1460_v20, %s1244_s14  ;;  %528 = vrot.lane.b32.xlu1 %v1456_v14, %s1247_s16  ;;  %v416_v40 = vadd.f32 %v415_v24, %v308_v32  ;;  %v1510_v41 = vsel %vm423_vm14, %v410_v37, %v431_v39  ;;  %v1086_v24 = vld [vmem:[%s2016_s2 + $0x12] ss:$8 sm:$0x3] }
 0x182   :  { %v432_v36 = vmul.f32 0.05, %v414_v34  ;;  %vm424_vm13 = vcmp.gt.f32.partialorder %v414_v34, 0.0  ;;  %v1619_v30 = vrot.slane %v1086_v24, %v1291_v4  ;;  %v1626_v33 = vrot.slane %v1086_v24, %v1288_v3 }
 0x183   :  { %v433_v42 = vmul.f32 0.05, %v416_v40  ;;  %vm425_vm15 = vcmp.gt.f32.partialorder %v416_v40, 0.0 }
 0x184   :  { %v1500_v38 = vsel %vm424_vm13, %v414_v34, %v432_v36 }
 0x185   :  { %530 = vrot.lane.b32.xlu0 %v1460_v20, %s1247_s16  ;;  %571 = vrot.lane.b32.xlu1 %v1456_v14, %s1248_s17  ;;  %v1516_v43 = vsel %vm425_vm15, %v416_v40, %v433_v42 }
 0x189   :  { %573 = vrot.lane.b32.xlu0 %v1460_v20, %s1248_s17  ;;  %450 = vrot.lane.b32.xlu1 %v1474_v27, %s1245_s15 }
 0x18d   :  { %452 = vrot.lane.b32.xlu0 %v1480_v29, %s1245_s15  ;;  %493 = vrot.lane.b32.xlu1 %v1474_v27, %s1244_s14 }
 0x191   :  { %495 = vrot.lane.b32.xlu0 %v1480_v29, %s1244_s14  ;;  %536 = vrot.lane.b32.xlu1 %v1474_v27, %s1247_s16 }
 0x195   :  { %538 = vrot.lane.b32.xlu0 %v1480_v29, %s1247_s16  ;;  %579 = vrot.lane.b32.xlu1 %v1474_v27, %s1248_s17 }
 0x199   :  { %581 = vrot.lane.b32.xlu0 %v1480_v29, %s1248_s17  ;;  %446 = vrot.lane.b32.xlu1 %v1494_v35, %s1245_s15 }
 0x19d   :  { %448 = vrot.lane.b32.xlu0 %v1500_v38, %s1245_s15  ;;  %489 = vrot.lane.b32.xlu1 %v1494_v35, %s1244_s14 }
 0x1a1   :  { %491 = vrot.lane.b32.xlu0 %v1500_v38, %s1244_s14  ;;  %532 = vrot.lane.b32.xlu1 %v1494_v35, %s1247_s16 }
 0x1a5   :  { %534 = vrot.lane.b32.xlu0 %v1500_v38, %s1247_s16  ;;  %454 = vrot.lane.b32.xlu1 %v1510_v41, %s1245_s15 }
 0x1a9   :  { %456 = vrot.lane.b32.xlu0 %v1516_v43, %s1245_s15  ;;  %575 = vrot.lane.b32.xlu1 %v1494_v35, %s1248_s17 }
 0x1ad   :  { %577 = vrot.lane.b32.xlu0 %v1500_v38, %s1248_s17  ;;  %497 = vrot.lane.b32.xlu1 %v1510_v41, %s1244_s14 }
 0x1b1   :  { %499 = vrot.lane.b32.xlu0 %v1516_v43, %s1244_s14  ;;  %540 = vrot.lane.b32.xlu1 %v1510_v41, %s1247_s16 }
 0x1b5   :  { %616 = vrot.lane.b32.xlu0 %v1460_v20, %s1249_s18  ;;  %583 = vrot.lane.b32.xlu1 %v1510_v41, %s1248_s17 }
 0x1b9   :  { %542 = vrot.lane.b32.xlu0 %v1516_v43, %s1247_s16  ;;  %614 = vrot.lane.b32.xlu1 %v1456_v14, %s1249_s18 }
 0x1bd   :  { %624 = vrot.lane.b32.xlu0 %v1480_v29, %s1249_s18  ;;  %622 = vrot.lane.b32.xlu1 %v1474_v27, %s1249_s18 }
 0x1c1   :  { %620 = vrot.lane.b32.xlu0 %v1500_v38, %s1249_s18  ;;  %618 = vrot.lane.b32.xlu1 %v1494_v35, %s1249_s18 }
 0x1c5   :  { %659 = vrot.lane.b32.xlu0 %v1460_v20, %s1251_s19  ;;  %626 = vrot.lane.b32.xlu1 %v1510_v41, %s1249_s18 }
 0x1c9   :  { %585 = vrot.lane.b32.xlu0 %v1516_v43, %s1248_s17  ;;  %657 = vrot.lane.b32.xlu1 %v1456_v14, %s1251_s19 }
 0x1cd   :  { %667 = vrot.lane.b32.xlu0 %v1480_v29, %s1251_s19  ;;  %665 = vrot.lane.b32.xlu1 %v1474_v27, %s1251_s19 }
 0x1d1   :  { %628 = vrot.lane.b32.xlu0 %v1516_v43, %s1249_s18  ;;  %661 = vrot.lane.b32.xlu1 %v1494_v35, %s1251_s19 }
 0x1d5   :  { %663 = vrot.lane.b32.xlu0 %v1500_v38, %s1251_s19  ;;  %669 = vrot.lane.b32.xlu1 %v1510_v41, %s1251_s19 }
 0x1d9   :  { %671 = vrot.lane.b32.xlu0 %v1516_v43, %s1251_s19  ;;  %702 = vperm.xlu1 %1210, %v1336_v9   ;;  %v1586_v9 = vrot.slane %v1085_v52, %v1288_v3 }
 0x1dd   :  { %707 = vperm.xlu0 %1211, %v1331_v8   ;;  %v1589_v8 = vrot.slane %v1085_v52, %v1291_v4 }
 0x1eb   :  { %v443_v46 = vpop.permute.xlu1 %442 }
 0x1ef   :  { %v445_v47 = vpop.permute.xlu0 %444  ;;  %v486_v48 = vpop.permute.xlu1 %485 }
 0x1f3   :  { %v488_v49 = vpop.permute.xlu0 %487  ;;  %v1574_v50 = vpop.permute.xlu1 %528 }
 0x1f7   :  { %v1576_v51 = vpop.permute.xlu0 %530  ;;  %v1578_v6 = vpop.permute.xlu1 %571 }
 0x1fb   :  { %v1583_v53 = vpop.permute.xlu0 %573  ;;  %v451_v5 = vpop.permute.xlu1 %450 }
 0x1fc   :  { %v458_v54 = vsel %vm97_vm1, %v443_v46, %v451_v5  ;;  %v462_v55 = vsel %vm97_vm1, %v451_v5, %v443_v46 }
 0x1fd   :  { %v477_v60 = vmul.f32 %v1586_v9, %v462_v55  ;;  %v478_v62 = vmul.f32 %v1589_v8, %v458_v54  ;;  %v1087_v55 = vld [vmem:[%s2016_s2 + $0x13] ss:$8 sm:$0x3] }
 0x1ff   :  { %v453_v56 = vpop.permute.xlu0 %452  ;;  %v494_v57 = vpop.permute.xlu1 %493 }
 0x200   :  { %v459_v58 = vsel %vm97_vm1, %v445_v47, %v453_v56  ;;  %v463_v59 = vsel %vm97_vm1, %v453_v56, %v445_v47  ;;  %v501_v34 = vsel %vm117_vm0, %v486_v48, %v494_v57  ;;  %v505_v5 = vsel %vm117_vm0, %v494_v57, %v486_v48 }
 0x201   :  { %v479_v61 = vmul.f32 %v1586_v9, %v463_v59  ;;  %v480_v63 = vmul.f32 %v1589_v8, %v459_v58  ;;  %v1657_v57 = vrot.slane %v1087_v55, %v1291_v4 }
 0x203   :  { %v496_v2 = vpop.permute.xlu0 %495  ;;  %v1603_v10 = vpop.permute.xlu1 %536  ;;  %v1107_v11 = vpack.c.bf16 %v480_v63, %v478_v62  ;;  %v1109_v12 = vpack.c.bf16 %v479_v61, %v477_v60  ;;  %v520_v61 = vmul.f32 %v1626_v33, %v505_v5 }
 0x204   :  { %v502_v28 = vsel %vm117_vm0, %v488_v49, %v496_v2  ;;  %v506_v39 = vsel %vm117_vm0, %v496_v2, %v488_v49  ;;  %v521_v49 = vmul.f32 %v1619_v30, %v501_v34 }
 0x205   :  { %1108 = vmatprep.subr.bf16.mxu1 %v1107_v11  ;;  %v523_v40 = vmul.f32 %v1619_v30, %v502_v28  ;;  %v522_v54 = vmul.f32 %v1626_v33, %v506_v39  ;;  %v544_v11 = vsel %vm137_vm3, %v1574_v50, %v1603_v10  ;;  %v1680_v39 = vrot.slane %v1087_v55, %v1288_v3 }
 0x206   :  { %1110 = vmatpush1.bf16.msra.mxu1 %v1109_v12 }
 0x207   :  { %v539_v13 = vpop.permute.xlu0 %538  ;;  %v1605_v16 = vpop.permute.xlu1 %579  ;;  %v1115_v48 = vpack.c.bf16 %v523_v40, %v521_v49 }
 0x208   :  { %v545_v62 = vsel %vm137_vm3, %v1576_v51, %v539_v13  ;;  %v549_v24 = vsel %vm137_vm3, %v539_v13, %v1576_v51  ;;  %v548_v51 = vsel %vm137_vm3, %v1603_v10, %v1574_v50  ;;  %v564_v13 = vmul.f32 %v1657_v57, %v544_v11 }
 0x20b   :  { %v1607_v17 = vpop.permute.xlu0 %581  ;;  %v447_v18 = vpop.permute.xlu1 %446 }
 0x20c   :  { %v592_v11 = vsel %vm157_vm4, %v1607_v17, %v1583_v53 }
 0x20f   :  { %v449_v19 = vpop.permute.xlu0 %448  ;;  %v490_v21 = vpop.permute.xlu1 %489 }
 0x213   :  { %v492_v22 = vpop.permute.xlu0 %491  ;;  %v1609_v23 = vpop.permute.xlu1 %532 }
 0x217   :  { %v1614_v25 = vpop.permute.xlu0 %534  ;;  %v455_v26 = vpop.permute.xlu1 %454 }
 0x218   :  { %v460_v31 = vsel %vm97_vm1, %v447_v18, %v455_v26  ;;  %v464_v32 = vsel %vm97_vm1, %v455_v26, %v447_v18  ;;  %v566_v26 = vmul.f32 %v1657_v57, %v545_v62 }
 0x219   :  { %v481_v45 = vmul.f32 %v1586_v9, %v464_v32  ;;  %v482_v46 = vmul.f32 %v1589_v8, %v460_v31 }
 0x21b   :  { %v457_v36 = vpop.permute.xlu0 %456  ;;  %v1630_v37 = vpop.permute.xlu1 %575 }
 0x21c   :  { %v461_v42 = vsel %vm97_vm1, %v449_v19, %v457_v36  ;;  %v465_v44 = vsel %vm97_vm1, %v457_v36, %v449_v19  ;;  %v1117_v19 = vpack.c.bf16 %v522_v54, %v520_v61 }
 0x21d   :  { %v483_v47 = vmul.f32 %v1586_v9, %v465_v44  ;;  %v484_v52 = vmul.f32 %v1589_v8, %v461_v42 }
 0x21f   :  { %v1650_v56 = vpop.permute.xlu0 %577  ;;  %v498_v58 = vpop.permute.xlu1 %497  ;;  %v1111_v59 = vpack.c.bf16 %v484_v52, %v482_v46  ;;  %v1113_v60 = vpack.c.bf16 %v483_v47, %v481_v45  ;;  %v565_v45 = vmul.f32 %v1680_v39, %v549_v24  ;;  %v1123_v46 = vpack.c.bf16 %v566_v26, %v564_v13 }
 0x220   :  { %v503_v63 = vsel %vm117_vm0, %v490_v21, %v498_v58  ;;  %v507_v2 = vsel %vm117_vm0, %v498_v58, %v490_v21  ;;  %v563_v47 = vmul.f32 %v1680_v39, %v548_v51  ;;  %v591_v24 = vsel %vm157_vm4, %v1605_v16, %v1578_v6 }
 0x221   :  { %1112 = vmatprep.subr.bf16.mxu1 %v1111_v59  ;;  %v524_v31 = vmul.f32 %v1626_v33, %v507_v2  ;;  %v525_v32 = vmul.f32 %v1619_v30, %v503_v63  ;;  %v1088_v2 = vld [vmem:[%s2016_s2 + $0x15] ss:$8 sm:$0x3] }
 0x222   :  { %1114 = vmatpush1.bf16.msra.mxu1 %v1113_v60  ;;  %v1125_v55 = vpack.c.bf16 %v565_v45, %v563_v47  ;;  %v1732_v26 = vrot.slane %v1088_v2, %v1288_v3 }
 0x223   :  { %v500_v12 = vpop.permute.xlu0 %499  ;;  %1116 = vmatprep.subr.bf16.mxu1 %v1115_v48  ;;  %v541_v18 = vpop.permute.xlu1 %540 }
 0x224   :  { %v504_v28 = vsel %vm117_vm0, %v492_v22, %v500_v12  ;;  %v508_v21 = vsel %vm117_vm0, %v500_v12, %v492_v22  ;;  %v546_v52 = vsel %vm137_vm3, %v1609_v23, %v541_v18  ;;  %v550_v50 = vsel %vm137_vm3, %v541_v18, %v1609_v23 }
 0x225   :  { %v526_v34 = vmul.f32 %v1626_v33, %v508_v21  ;;  %v527_v36 = vmul.f32 %v1619_v30, %v504_v28  ;;  %v567_v58 = vmul.f32 %v1680_v39, %v550_v50  ;;  %v568_v59 = vmul.f32 %v1657_v57, %v546_v52 }
 0x226   :  { %1118 = vmatpush1.bf16.msra.mxu1 %v1117_v19  ;;  %v1717_v12 = vrot.slane %v1088_v2, %v1291_v4  ;;  %v1135_v21 = vpack.c.bf16 %v1516_v43, %v1510_v41 }
 0x227   :  { %v1687_v22 = vpop.permute.xlu0 %616  ;;  %v584_v40 = vpop.permute.xlu1 %583  ;;  %v1119_v42 = vpack.c.bf16 %v527_v36, %v525_v32  ;;  %v1121_v44 = vpack.c.bf16 %v526_v34, %v524_v31  ;;  %v587_v31 = vsel %vm157_vm4, %v1578_v6, %v1605_v16  ;;  %v1137_v6 = vpack.c.bf16 %v1500_v38, %v1494_v35 }
 0x228   :  { %v609_v28 = vmul.f32 %v1717_v12, %v592_v11  ;;  %v589_v41 = vsel %vm157_vm4, %v1630_v37, %v584_v40  ;;  %v593_v43 = vsel %vm157_vm4, %v584_v40, %v1630_v37  ;;  %v606_v16 = vmul.f32 %v1732_v26, %v587_v31 }
 0x229   :  { %1120 = vmatprep.subr.bf16.mxu1 %v1119_v42  ;;  %v610_v42 = vmul.f32 %v1732_v26, %v589_v41  ;;  %v611_v37 = vmul.f32 %v1717_v12, %v593_v43 }
 0x22a   :  { %1122 = vmatpush1.bf16.msra.mxu1 %v1121_v44 }
 0x22b   :  { %v543_v10 = vpop.permute.xlu0 %542  ;;  %1124 = vmatprep.subr.bf16.mxu1 %v1123_v46  ;;  %v615_v5 = vpop.permute.xlu1 %614 }
 0x22c   :  { %v547_v49 = vsel %vm137_vm3, %v1614_v25, %v543_v10  ;;  %v551_v54 = vsel %vm137_vm3, %v543_v10, %v1614_v25  ;;  %v1131_v25 = vpack.c.bf16 %v1480_v29, %v1474_v27  ;;  %v588_v27 = vsel %vm157_vm4, %v1583_v53, %v1607_v17  ;;  %v1089_v53 = vld [vmem:[%s2016_s2 + $0x16] ss:$8 sm:$0x3] }
 0x22d   :  { %v569_v60 = vmul.f32 %v1680_v39, %v551_v54  ;;  %v570_v23 = vmul.f32 %v1657_v57, %v547_v49  ;;  %v1133_v29 = vpack.c.bf16 %v1460_v20, %v1456_v14  ;;  %v607_v14 = vmul.f32 %v1717_v12, %v591_v24 }
 0x22e   :  { %1126 = vmatpush1.bf16.msra.mxu1 %v1125_v55  ;;  %v608_v20 = vmul.f32 %v1732_v26, %v588_v27  ;;  %v1756_v34 = vrot.slane %v1089_v53, %v1291_v4  ;;  %v1766_v35 = vrot.slane %v1089_v53, %v1288_v3 }
 0x22f   :  { %v625_v61 = vpop.permute.xlu0 %624  ;;  %v623_v62 = vpop.permute.xlu1 %622  ;;  %v1127_v48 = vpack.c.bf16 %v570_v23, %v568_v59  ;;  %v1129_v63 = vpack.c.bf16 %v569_v60, %v567_v58  ;;  %v1139_v36 = vpack.c.bf16 %v609_v28, %v607_v14 }
 0x230   :  { %v635_v51 = vsel %vm177_vm8, %v625_v61, %v1687_v22  ;;  %v634_v13 = vsel %vm177_vm8, %v623_v62, %v615_v5  ;;  %v1141_v44 = vpack.c.bf16 %v608_v20, %v606_v16  ;;  %v631_v45 = vsel %vm177_vm8, %v1687_v22, %v625_v61  ;;  %v1090_v22 = vld [vmem:[%s2016_s2 + $0x17] ss:$8 sm:$0x3] }
 0x231   :  { %1128 = vmatprep.subr.bf16.mxu1 %v1127_v48  ;;  %v630_v46 = vsel %vm177_vm8, %v615_v5, %v623_v62  ;;  %v652_v50 = vmul.f32 %v1756_v34, %v635_v51  ;;  %v650_v10 = vmul.f32 %v1756_v34, %v634_v13  ;;  %v651_v5 = vmul.f32 %v1766_v35, %v631_v45 }
 0x232   :  { %1130 = vmatpush1.bf16.msra.mxu1 %v1129_v63  ;;  %v649_v55 = vmul.f32 %v1766_v35, %v630_v46  ;;  %v1793_v62 = vrot.slane %v1090_v22, %v1291_v4  ;;  %v1802_v24 = vrot.slane %v1090_v22, %v1288_v3 }
 0x233   :  { %v1719_v18 = vpop.permute.xlu0 %620  ;;  %1132 = vmatprep.subr.bf16.mxu1 %v1131_v25  ;;  %v619_v19 = vpop.permute.xlu1 %618  ;;  %v1147_v48 = vpack.c.bf16 %v652_v50, %v650_v10  ;;  %v46_v50 = vld [vmem:[%s2015_s1 + $0x8] sm:$0xff]  ;;  %v49_v10 = vld [vmem:[%s2015_s1 + $0x38] sm:$0xff] }
 0x234   :  { %v1149_v4 = vpack.c.bf16 %v651_v5, %v649_v55 }
 0x236   :  { %1134 = vmatpush1.bf16.msra.mxu1 %v1133_v29 }
 0x237   :  { %v660_v17 = vpop.permute.xlu0 %659  ;;  %v627_v32 = vpop.permute.xlu1 %626  ;;  %1136 = vmatprep.subr.bf16.mxu1 %v1135_v21 }
 0x238   :  { %v632_v23 = vsel %vm177_vm8, %v619_v19, %v627_v32  ;;  %v636_v61 = vsel %vm177_vm8, %v627_v32, %v619_v19 }
 0x239   :  { %v653_v25 = vmul.f32 %v1766_v35, %v632_v23  ;;  %v654_v11 = vmul.f32 %v1756_v34, %v636_v61 }
 0x23a   :  { %1138 = vmatpush1.bf16.msra.mxu1 %v1137_v6 }
 0x23b   :  { %v586_v38 = vpop.permute.xlu0 %585  ;;  %v658_v40 = vpop.permute.xlu1 %657  ;;  %1140 = vmatprep.subr.bf16.mxu1 %v1139_v36 }
 0x23c   :  { %v590_v47 = vsel %vm157_vm4, %v1650_v56, %v586_v38  ;;  %v594_v52 = vsel %vm157_vm4, %v586_v38, %v1650_v56 }
 0x23d   :  { %v612_v49 = vmul.f32 %v1732_v26, %v590_v47  ;;  %v613_v54 = vmul.f32 %v1717_v12, %v594_v52 }
 0x23e   :  { %1142 = vmatpush1.bf16.msra.mxu1 %v1141_v44 }
 0x23f   :  { %v668_v58 = vpop.permute.xlu0 %667  ;;  %v666_v59 = vpop.permute.xlu1 %665  ;;  %v1143_v56 = vpack.c.bf16 %v613_v54, %v611_v37  ;;  %v1145_v60 = vpack.c.bf16 %v612_v49, %v610_v42  ;;  %v48_v49 = vld [vmem:[%s2015_s1 + $0x30] sm:$0xff] }
 0x240   :  { %v678_v63 = vsel %vm197_vm10, %v668_v58, %v660_v17  ;;  %v677_v2 = vsel %vm197_vm10, %v666_v59, %v658_v40  ;;  %v674_v29 = vsel %vm197_vm10, %v660_v17, %v668_v58  ;;  %v673_v28 = vsel %vm197_vm10, %v658_v40, %v666_v59 }
 0x241   :  { %1144 = vmatprep.subr.bf16.mxu1 %v1143_v56  ;;  %v695_v3 = vmul.f32 %v1793_v62, %v678_v63  ;;  %v693_v53 = vmul.f32 %v1793_v62, %v677_v2  ;;  %v694_v6 = vmul.f32 %v1802_v24, %v674_v29  ;;  %v692_v16 = vmul.f32 %v1802_v24, %v673_v28 }
 0x242   :  { %1146 = vmatpush1.bf16.msra.mxu1 %v1145_v60 }
 0x243   :  { %v629_v19 = vpop.permute.xlu0 %628  ;;  %v662_v27 = vpop.permute.xlu1 %661  ;;  %1148 = vmatprep.subr.bf16.mxu1 %v1147_v48  ;;  %v1155_v36 = vpack.c.bf16 %v695_v3, %v693_v53  ;;  %v1157_v38 = vpack.c.bf16 %v694_v6, %v692_v16  ;;  %v1219_v3 = vld [vmem:[%s2015_s1 + $0x48] sm:$0xff]  ;;  %v1257_v53 = vmov 0  }
 0x244   :  { %v633_v21 = vsel %vm177_vm8, %v1719_v18, %v629_v19  ;;  %v637_v31 = vsel %vm177_vm8, %v629_v19, %v1719_v18 }
 0x245   :  { %v655_v14 = vmul.f32 %v1766_v35, %v633_v21  ;;  %v656_v20 = vmul.f32 %v1756_v34, %v637_v31  ;;  %v1256_v21 = vmov 3   ;;  %v1218_v31 = vld [vmem:[%s2015_s1 + $0x20] sm:$0xff] }
 0x246   :  { %1150 = vmatpush1.bf16.msra.mxu1 %v1149_v4  ;;  %1212 = vset.pattern.permute.xlu0 %v1256_v21 }
 0x247   :  { %v664_v17 = vpop.permute.xlu0 %663  ;;  %v670_v32 = vpop.permute.xlu1 %669  ;;  %v1151_v41 = vpack.c.bf16 %v656_v20, %v654_v11  ;;  %v1153_v43 = vpack.c.bf16 %v655_v14, %v653_v25  ;;  %1213 = vset.pattern.permute.xlu1 %v1256_v21  ;;  %v58_v14 = vld [vmem:[%s2015_s1 + $0x20] ss:$0 sm:$0xff]  ;;  %v1258_v20 = vmov 4  }
 0x248   :  { %v675_v18 = vsel %vm197_vm10, %v662_v27, %v670_v32  ;;  %v679_v51 = vsel %vm197_vm10, %v670_v32, %v662_v27 }
 0x249   :  { %1152 = vmatprep.subr.bf16.mxu1 %v1151_v41  ;;  %v696_v40 = vmul.f32 %v1802_v24, %v675_v18  ;;  %v697_v44 = vmul.f32 %v1793_v62, %v679_v51 }
 0x24a   :  { %1154 = vmatpush1.bf16.msra.mxu1 %v1153_v43 }
 0x24b   :  { %v672_v13 = vpop.permute.xlu0 %671  ;;  %1156 = vmatprep.subr.bf16.mxu1 %v1155_v36 }
 0x24c   :  { %v676_v42 = vsel %vm197_vm10, %v664_v17, %v672_v13  ;;  %v680_v37 = vsel %vm197_vm10, %v672_v13, %v664_v17 }
 0x24d   :  { %v698_v45 = vmul.f32 %v1802_v24, %v676_v42  ;;  %v699_v46 = vmul.f32 %v1793_v62, %v680_v37 }
 0x24e   :  { %1158 = vmatpush1.bf16.msra.mxu1 %v1157_v38 }
 0x24f   :  { %v1159_v47 = vpack.c.bf16 %v699_v46, %v697_v44  ;;  %v1161_v52 = vpack.c.bf16 %v698_v45, %v696_v40 }
 0x251   :  { %1160 = vmatprep.subr.bf16.mxu1 %v1159_v47 }
 0x252   :  { %1162 = vmatpush1.bf16.msra.mxu1 %v1161_v52 }
 0x255   :  { %782 = vmatmul.mubr.f32.vlgmr.msra.gmra.mrb[0].mxu1 %v46_v50 }
 0x256   :  { %1098 = vmatprep.mubr.msk.f32.mxu1 %vm710_vm2, %v49_v10 }
 0x258   :  { %v703_v54 = vpop.permute.xlu1 %702 }
 0x259   :  { %788 = vmatmul.mubr.f32.gmra.mrb[2].mxu1 %v48_v49 }
 0x25c   :  { %v708_v59 = vpop.permute.xlu0 %707 }
 0x328   :  { %v783_v22 = vpop.f32.mrb[0].mxu1 }
 0x329   :  { %v784_v5 = vadd.f32 %v783_v22, %v703_v54  ;;  %v785_v55 = vpop.f32.mrb[1].mxu1 }
 0x32a   :  { %v786_v58 = vadd.f32 %v785_v55, %v703_v54 }
 0x32b   :  { %vm794_vm6 = vcmp.gt.f32.partialorder %v784_v5, 0.0  ;;  %v798_v56 = vmul.f32 0.05, %v784_v5 }
 0x32c   :  { %v789_v60 = vpop.f32.mrb[2].mxu1  ;;  %v799_v63 = vmul.f32 0.05, %v786_v58  ;;  %vm795_vm5 = vcmp.gt.f32.partialorder %v786_v58, 0.0 }
 0x32d   :  { %v1842_v23 = vsel %vm794_vm6, %v784_v5, %v798_v56  ;;  %v790_v61 = vadd.f32 %v789_v60, %v708_v59  ;;  %v791_v48 = vpop.f32.mrb[3].mxu1 }
 0x32e   :  { %v792_v2 = vadd.f32 %v791_v48, %v708_v59  ;;  %822 = vrot.lane.b32.xlu0 %v1842_v23, %s1244_s14  ;;  %806 = vrot.lane.b32.xlu1 %v1842_v23, %s1245_s15  ;;  %v1850_v27 = vsel %vm795_vm5, %v786_v58, %v799_v63 }
 0x32f   :  { %vm796_vm7 = vcmp.gt.f32.partialorder %v790_v61, 0.0  ;;  %v800_v25 = vmul.f32 0.05, %v790_v61 }
 0x330   :  { %vm797_vm9 = vcmp.gt.f32.partialorder %v792_v2, 0.0  ;;  %v801_v11 = vmul.f32 0.05, %v792_v2 }
 0x331   :  { %v1848_v19 = vsel %vm796_vm7, %v790_v61, %v800_v25 }
 0x332   :  { %v1852_v4 = vsel %vm797_vm9, %v792_v2, %v801_v11  ;;  %838 = vrot.lane.b32.xlu0 %v1842_v23, %s1247_s16  ;;  %808 = vrot.lane.b32.xlu1 %v1848_v19, %s1245_s15  ;;  %v1177_v29 = vpack.c.bf16 %v1848_v19, %v1842_v23 }
 0x333   :  { %v1175_v28 = vpack.c.bf16 %v1852_v4, %v1850_v27 }
 0x336   :  { %854 = vrot.lane.b32.xlu0 %v1842_v23, %s1248_s17  ;;  %824 = vrot.lane.b32.xlu1 %v1848_v19, %s1244_s14 }
 0x33a   :  { %870 = vrot.lane.b32.xlu0 %v1842_v23, %s1249_s18  ;;  %840 = vrot.lane.b32.xlu1 %v1848_v19, %s1247_s16 }
 0x33e   :  { %810 = vrot.lane.b32.xlu0 %v1850_v27, %s1245_s15  ;;  %856 = vrot.lane.b32.xlu1 %v1848_v19, %s1248_s17 }
 0x342   :  { %826 = vrot.lane.b32.xlu0 %v1850_v27, %s1244_s14  ;;  %872 = vrot.lane.b32.xlu1 %v1848_v19, %s1249_s18 }
 0x346   :  { %842 = vrot.lane.b32.xlu0 %v1850_v27, %s1247_s16  ;;  %812 = vrot.lane.b32.xlu1 %v1852_v4, %s1245_s15 }
 0x34a   :  { %886 = vrot.lane.b32.xlu0 %v1842_v23, %s1251_s19  ;;  %828 = vrot.lane.b32.xlu1 %v1852_v4, %s1244_s14 }
 0x34e   :  { %858 = vrot.lane.b32.xlu0 %v1850_v27, %s1248_s17  ;;  %844 = vrot.lane.b32.xlu1 %v1852_v4, %s1247_s16 }
 0x352   :  { %874 = vrot.lane.b32.xlu0 %v1850_v27, %s1249_s18  ;;  %888 = vrot.lane.b32.xlu1 %v1848_v19, %s1251_s19 }
 0x356   :  { %890 = vrot.lane.b32.xlu0 %v1850_v27, %s1251_s19  ;;  %860 = vrot.lane.b32.xlu1 %v1852_v4, %s1248_s17 }
 0x35a   :  { %876 = vrot.lane.b32.xlu1 %v1852_v4, %s1249_s18  ;;  %903 = vperm.xlu0 %1212, %v1218_v31  }
 0x35e   :  { %892 = vrot.lane.b32.xlu1 %v1852_v4, %s1251_s19  ;;  %1215 = vset.pattern.permute.xlu0 %v1257_v53 }
 0x35f   :  { %1011 = vperm.xlu0 %1215, %v1219_v3  }
 0x362   :  { %907 = vperm.xlu1 %1213, %v1219_v3  }
 0x363   :  { %1217 = vset.pattern.permute.xlu0 %v1258_v20 }
 0x366   :  { %1214 = vset.pattern.permute.xlu1 %v1257_v53 }
 0x367   :  { %1007 = vperm.xlu1 %1214, %v1218_v31  }
 0x36b   :  { %1216 = vset.pattern.permute.xlu1 %v1258_v20 }
 0x36c   :  { %1034 = vperm.xlu1 %1216, %v58_v14  }
 0x3a0   :  { %v823_v17 = vpop.permute.xlu0 %822  ;;  %v807_v32 = vpop.permute.xlu1 %806 }
 0x3a4   :  { %v839_v41 = vpop.permute.xlu0 %838  ;;  %v809_v43 = vpop.permute.xlu1 %808 }
 0x3a8   :  { %v855_v6 = vpop.permute.xlu0 %854  ;;  %v825_v16 = vpop.permute.xlu1 %824 }
 0x3ac   :  { %v871_v36 = vpop.permute.xlu0 %870  ;;  %v841_v18 = vpop.permute.xlu1 %840 }
 0x3b0   :  { %v811_v51 = vpop.permute.xlu0 %810  ;;  %v857_v13 = vpop.permute.xlu1 %856 }
 0x3b1   :  { %v814_v38 = vsel %vm97_vm1, %v807_v32, %v811_v51  ;;  %v816_v40 = vsel %vm97_vm1, %v811_v51, %v807_v32 }
 0x3b2   :  { %v818_v52 = vmul.f32 %v816_v40, %v1586_v9  ;;  %v819_v50 = vmul.f32 %v814_v38, %v1589_v8 }
 0x3b4   :  { %v827_v42 = vpop.permute.xlu0 %826  ;;  %v1911_v37 = vpop.permute.xlu1 %872 }
 0x3b5   :  { %v830_v54 = vsel %vm117_vm0, %v823_v17, %v827_v42  ;;  %v832_v22 = vsel %vm117_vm0, %v827_v42, %v823_v17 }
 0x3b8   :  { %v843_v44 = vpop.permute.xlu0 %842  ;;  %v813_v45 = vpop.permute.xlu1 %812 }
 0x3b9   :  { %v815_v46 = vsel %vm97_vm1, %v809_v43, %v813_v45  ;;  %v817_v47 = vsel %vm97_vm1, %v813_v45, %v809_v43  ;;  %v846_v63 = vsel %vm137_vm3, %v839_v41, %v843_v44  ;;  %v848_v2 = vsel %vm137_vm3, %v843_v44, %v839_v41 }
 0x3ba   :  { %v820_v10 = vmul.f32 %v817_v47, %v1586_v9  ;;  %v821_v49 = vmul.f32 %v815_v46, %v1589_v8  ;;  %v834_v9 = vmul.f32 %v832_v22, %v1626_v33  ;;  %v835_v8 = vmul.f32 %v830_v54, %v1619_v30 }
 0x3bb   :  { %v851_v53 = vmul.f32 %v846_v63, %v1657_v57 }
 0x3bc   :  { %v1165_v5 = vpack.c.bf16 %v820_v10, %v818_v52  ;;  %v887_v55 = vpop.permute.xlu0 %886  ;;  %v829_v58 = vpop.permute.xlu1 %828  ;;  %v1163_v59 = vpack.c.bf16 %v821_v49, %v819_v50 }
 0x3bd   :  { %v831_v56 = vsel %vm117_vm0, %v825_v16, %v829_v58  ;;  %v833_v60 = vsel %vm117_vm0, %v829_v58, %v825_v16  ;;  %v50_v58 = vld [vmem:[%s2015_s1 + $0x18] sm:$0xff]  ;;  %vm910_vm0 = vcmask 916480   ;;  %s1260_s1 = smov [#allocation2]  }
 0x3be   :  { %v836_v61 = vmul.f32 %v833_v60, %v1626_v33  ;;  %v837_v48 = vmul.f32 %v831_v56, %v1619_v30  ;;  %1164 = vmatprep.subr.bf16.mxu0 %v1163_v59  ;;  %v850_v30 = vmul.f32 %v848_v2, %v1680_v39  ;;  %s1070_s5 = sshll.u32 %s1260_s1, 4  ;;  %s1071_s5 = int_to_ptr.vmem [resolvable:$true] %s1070_s5 }
 0x3bf   :  { %1166 = vmatpush1.bf16.msra.mxu0 %v1165_v5  ;;  %s1220_s6 = scalar_lea.vmem %s1071_s5, 32  ;;  %p1225_p1 = scmp.lt.s32.totalorder %s1071_s5, %s1071_s5 }
 0x3c0   :  { %v1169_v25 = vpack.c.bf16 %v836_v61, %v834_v9  ;;  %v859_v11 = vpop.permute.xlu0 %858  ;;  %v845_v21 = vpop.permute.xlu1 %844  ;;  %v1167_v31 = vpack.c.bf16 %v837_v48, %v835_v8  ;;  %p1221_p0 = scmp.ne.s32.totalorder %s1071_s5, %s1220_s6  ;;  %p1226_p2 = scmp.lt.s32.totalorder %s1220_s6, %s1220_s6 }
 0x3c1   :  { %v847_v3 = vsel %vm137_vm3, %v841_v18, %v845_v21  ;;  %v849_v33 = vsel %vm137_vm3, %v845_v21, %v841_v18  ;;  %v862_v16 = vsel %vm157_vm4, %v855_v6, %v859_v11  ;;  %v864_v18 = vsel %vm157_vm4, %v859_v11, %v855_v6 }
 0x3c2   :  { %v852_v14 = vmul.f32 %v849_v33, %v1680_v39  ;;  %v853_v20 = vmul.f32 %v847_v3, %v1657_v57  ;;  %1168 = vmatprep.subr.bf16.mxu0 %v1167_v31  ;;  %v866_v42 = vmul.f32 %v862_v16, %v1732_v26  ;;  %v867_v38 = vmul.f32 %v864_v18, %v1717_v12  ;;  %p1227_p3 = por %p1226_p2, %p1225_p1 }
 0x3c3   :  { %1170 = vmatpush1.bf16.msra.mxu0 %v1169_v25 }
 0x3c4   :  { %v1173_v17 = vpack.c.bf16 %v852_v14, %v850_v30  ;;  %v889_v32 = vpop.permute.xlu1 %888  ;;  %v1171_v41 = vpack.c.bf16 %v853_v20, %v851_v53  ;;  %v875_v43 = vpop.permute.xlu0 %874  ;;  %p1228_p4 = pnand %p1227_p3, %p1221_p0 }
 0x3c5   :  { %v878_v44 = vsel %vm177_vm8, %v871_v36, %v875_v43  ;;  %v880_v27 = vsel %vm177_vm8, %v875_v43, %v871_v36 }
 0x3c6   :  { %1172 = vmatprep.subr.bf16.mxu0 %v1171_v41  ;;  %v882_v46 = vmul.f32 %v878_v44, %v1766_v35  ;;  %v883_v36 = vmul.f32 %v880_v27, %v1756_v34 }
 0x3c7   :  { %1174 = vmatpush1.bf16.msra.mxu0 %v1173_v17 }
 0x3c8   :  { %1176 = vmatprep.subr.bf16.mxu0 %v1175_v28  ;;  %v861_v39 = vpop.permute.xlu1 %860  ;;  %v891_v4 = vpop.permute.xlu0 %890 }
 0x3c9   :  { %v863_v57 = vsel %vm157_vm4, %v857_v13, %v861_v39  ;;  %v865_v51 = vsel %vm157_vm4, %v861_v39, %v857_v13  ;;  %v894_v19 = vsel %vm197_vm10, %v887_v55, %v891_v4 }
 0x3ca   :  { %v868_v40 = vmul.f32 %v863_v57, %v1732_v26  ;;  %v869_v6 = vmul.f32 %v865_v51, %v1717_v12 }
 0x3cb   :  { %1178 = vmatpush1.bf16.msra.mxu0 %v1177_v29  ;;  %v896_v29 = vsel %vm197_vm10, %v891_v4, %v887_v55 }
 0x3cc   :  { %v1181_v28 = vpack.c.bf16 %v868_v40, %v866_v42  ;;  %v877_v13 = vpop.permute.xlu1 %876  ;;  %v1179_v45 = vpack.c.bf16 %v869_v6, %v867_v38  ;;  %v1259_v40 = vmov 1966171168  }
 0x3cd   :  { %v879_v26 = vsel %vm177_vm8, %v1911_v37, %v877_v13  ;;  %v881_v12 = vsel %vm177_vm8, %v877_v13, %v1911_v37  ;;  %v1045_v6 = vunpack.c.l.s4 %v1259_v40 }
 0x3ce   :  { %v884_v47 = vmul.f32 %v879_v26, %v1766_v35  ;;  %v885_v23 = vmul.f32 %v881_v12, %v1756_v34  ;;  %1180 = vmatprep.subr.bf16.mxu0 %v1179_v45  ;;  %v898_v35 = vmul.f32 %v894_v19, %v1802_v24  ;;  %v899_v34 = vmul.f32 %v896_v29, %v1793_v62 }
 0x3cf   :  { %1182 = vmatpush1.bf16.msra.mxu0 %v1181_v28  ;;  %v1046_v45 = vunpack.c.0.s8 %v1045_v6 }
 0x3d0   :  { %v1185_v52 = vpack.c.bf16 %v884_v47, %v882_v46  ;;  %v893_v50 = vpop.permute.xlu1 %892  ;;  %v1183_v10 = vpack.c.bf16 %v885_v23, %v883_v36 }
 0x3d1   :  { %v895_v37 = vsel %vm197_vm10, %v889_v32, %v893_v50  ;;  %v897_v49 = vsel %vm197_vm10, %v893_v50, %v889_v32  ;;  %v1049_v47 = vsub.s32 %v1046_v45, %v1282_v1  ;;  %vm1061_vm10 = vcmp.lt.s32.totalorder %v61_v0, 256 }
 0x3d2   :  { %v900_v54 = vmul.f32 %v895_v37, %v1802_v24  ;;  %v901_v22 = vmul.f32 %v897_v49, %v1793_v62  ;;  %1184 = vmatprep.subr.bf16.mxu0 %v1183_v10 }
 0x3d3   :  { %1186 = vmatpush1.bf16.msra.mxu0 %v1185_v52 }
 0x3d4   :  { %v1189_v5 = vpack.c.bf16 %v900_v54, %v898_v35  ;;  %v1187_v55 = vpack.c.bf16 %v901_v22, %v899_v34 }
 0x3d6   :  { %1188 = vmatprep.subr.bf16.mxu0 %v1187_v55 }
 0x3d7   :  { %1190 = vmatpush1.bf16.msra.mxu0 %v1189_v5 }
 0x3d9   :  { %v904_v62 = vpop.permute.xlu0 %903 }
 0x3da   :  { %1099 = vmatmul.mubr.msk.f32.vlgmr.msra.gmra.mrb[8].mxu0 %vm910_vm0, %v50_v58 }
 0x3db   :  { %987 = vmatprep.mubr.f32.mxu0 %v1250_v7 }
 0x3de   :  { %1100 = vmatmul.mubr.msk.f32.gmra.mrb[10].mxu0 %vm910_vm0, %v51_v15  ;;  %v1012_v31 = vpop.permute.xlu0 %1011 }
 0x3e1   :  { %v908_v56 = vpop.permute.xlu1 %907 }
 0x3e6   :  { %v1008_v11 = vpop.permute.xlu1 %1007 }
 0x3eb   :  { %v1035_v4 = vpop.permute.xlu1 %1034 }
 0x4ad   :  { %v983_v24 = vpop.f32.mrb[8].mxu0 }
 0x4ae   :  { %v984_v59 = vadd.f32 %v983_v24, %v904_v62  ;;  %v985_v60 = vpop.f32.mrb[9].mxu0 }
 0x4af   :  { %v986_v9 = vadd.f32 %v985_v60, %v904_v62 }
 0x4b0   :  { %v998_v8 = vmul.f32 0.05, %v984_v59  ;;  %vm994_vm1 = vcmp.gt.f32.partialorder %v984_v59, 0.0 }
 0x4b1   :  { %v999_v61 = vmul.f32 0.05, %v986_v9  ;;  %v989_v48 = vpop.f32.mrb[10].mxu0  ;;  %vm995_vm3 = vcmp.gt.f32.partialorder %v986_v9, 0.0 }
 0x4b2   :  { %v990_v63 = vadd.f32 %v989_v48, %v908_v56  ;;  %v991_v2 = vpop.f32.mrb[11].mxu0  ;;  %v1002_v21 = vsel %vm994_vm1, %v984_v59, %v998_v8 }
 0x4b3   :  { %v992_v25 = vadd.f32 %v991_v2, %v908_v56  ;;  %v1003_v3 = vsel %vm995_vm3, %v986_v9, %v999_v61  ;;  %v1014_v53 = vmul.f32 %v1008_v11, %v1002_v21 }
 0x4b4   :  { %v1000_v7 = vmul.f32 0.05, %v990_v63  ;;  %vm996_vm4 = vcmp.gt.f32.partialorder %v990_v63, 0.0  ;;  %v1015_v17 = vmul.f32 %v1008_v11, %v1003_v3 }
 0x4b5   :  { %v1001_v33 = vmul.f32 0.05, %v992_v25  ;;  %vm997_vm8 = vcmp.gt.f32.partialorder %v992_v25, 0.0 }
 0x4b6   :  { %v1004_v30 = vsel %vm996_vm4, %v990_v63, %v1000_v7 }
 0x4b7   :  { %v1005_v14 = vsel %vm997_vm8, %v992_v25, %v1001_v33  ;;  %v1016_v20 = vmul.f32 %v1012_v31, %v1004_v30 }
 0x4b8   :  { %v1017_v32 = vmul.f32 %v1012_v31, %v1005_v14 }
 0x4b9   :  { %v1018_v41 = vadd.f32 %v1016_v20, %v1014_v53 }
 0x4ba   :  { %v1025_v43 = vadd.f32 %v1017_v32, %v1015_v17 }
 0x4bb   :  { %v1019_v16 = vrot.slane %v1018_v41, 4 }
 0x4bc   :  { %v1026_v18 = vrot.slane %v1025_v43, 4 }
 0x4bd   :  { %v1020_v39 = vadd.f32 %v1019_v16, %v1018_v41 }
 0x4be   :  { %v1027_v57 = vadd.f32 %v1026_v18, %v1025_v43 }
 0x4bf   :  { %v1021_v51 = vrot.slane %v1020_v39, 2 }
 0x4c0   :  { %v1028_v42 = vrot.slane %v1027_v57, 2 }
 0x4c1   :  { %v1022_v38 = vadd.f32 %v1021_v51, %v1020_v39 }
 0x4c2   :  { %v1029_v44 = vadd.f32 %v1028_v42, %v1027_v57 }
 0x4c3   :  { %v1023_v27 = vrot.slane %v1022_v38, 1 }
 0x4c4   :  { %v1030_v28 = vrot.slane %v1029_v44, 1 }
 0x4c5   :  { %v1024_v13 = vadd.f32 %v1023_v27, %v1022_v38 }
 0x4c6   :  { %v1031_v26 = vadd.f32 %v1030_v28, %v1029_v44 }
 0x4c7   :  { %v1037_v12 = vadd.f32 %v1035_v4, %v1024_v13 }
 0x4c8   :  { %v1038_v46 = vadd.f32 %v1035_v4, %v1031_v26 }
 0x4c9   :  { %v1039_v36 = vmax.f32 %v1037_v12, 0.0 }
 0x4ca   :  { %v1040_v23 = vmax.f32 %v1038_v46, 0.0 }
 0x4cc   :  { %v1043_v19 = vcombine.low %v1039_v36, %v1040_v23 }
 0x4ce   :  { %v1050_v29 = vrot.slane %v1043_v19, %v1049_v47 }
 0x4d0   :  { %v1057_v52 = vrot.slane %v1050_v29, %v1049_v47 }
 0x4d2   :  { %1063 = vst.msk [vmem:[#allocation2] sm:$0x3] %vm1061_vm10, %v1057_v52 }
 0x4d3   :  { %1231 = shalt.err (!%p1228_p4)
}
 0x4d4   :  { %s1232_s9 = scalar_lea.hbm %s2017_s3, 32 }
 0x4d5   :  { %p1233_p5 = scmp.ne.s32.totalorder %s2017_s3, %s1232_s9  ;;  %p1236_p6 = scmp.lt.u32.totalorder %s1232_s9, %s2017_s3 }
 0x4d7   :  { %p1238_p7 = pnand %p1236_p6, %p1233_p5 }
 0x4d9   :  { %1241 = shalt.err (!%p1238_p7)
}
 0x4da   :  { %1073 = dma.vmem_to_hbm [thread:$0]  %s1071_s5, 32, %s2017_s3, [#allocation3]  }
 0x4db   :  { %1242 = dma.done.wait [#allocation3], 32  }
 0x4dc   :  { %1243 = vsyncadd [#allocation3], 4294967264 }
 0x4dd   :  { %1077 = vsyncpa [#allocation3], 1 }

</bundles_post_ra>
